<compile_context>
chip_gen: v5e
topology: v5e:2x2
jax: 0.10.0
libtpu: 0.0.40
codegen_flags: <defaults>
</compile_context>

<pallas_src>
import jax
import jax.numpy as jnp
from jax.experimental import pallas as pl
from jax.experimental.pallas import tpu as pltpu


# ---------------------------------------------------------------------------
# Kernel: iterates the cell over a sequence of length T = grid size.
# ---------------------------------------------------------------------------
def mlrs_seq_kernel(x_ref, s0_ref, w1_ref, b1_ref, w2_ref, b2_ref,
                    out_ref, state_sc):
    H = w2_ref.shape[1] // 4          # w2 is (2H, 4H)
    t = pl.program_id(0)

    # Load the initial carried state into VMEM scratch on the first step.
    @pl.when(t == 0)
    def _():
        state_sc[...] = s0_ref[...]

    x = x_ref[...]                    # (B, NI)     -- per-step input tile
    state = state_sc[...]             # (B, 2H)     -- carried [hx | cx]
    hx = state[:, :H]
    cx = state[:, H:]

    # Fused first layer: [x, hx] @ block_diag(wi1, wh1) + [bi1, bh1], then ReLU.
    xh = jnp.concatenate([x, hx], axis=1)                                   # (B, NI+H)
    z = jnp.dot(xh, w1_ref[...], preferred_element_type=jnp.float32) + b1_ref[...]
    z = jnp.maximum(z, 0.0)                                                 # (B, 2H)

    # Fused second layer: relu(.) @ [wi2; wh2] + (bi2 + bh2 - forget_offset).
    g = jnp.dot(z, w2_ref[...], preferred_element_type=jnp.float32) + b2_ref[...]  # (B, 4H)

    # Gate nonlinearities: one sigmoid pass over the first 3H lanes, one tanh over the last H.
    sig = jax.nn.sigmoid(g[:, :3 * H])
    in_gate = sig[:, 0 * H:1 * H]
    forget_gate = sig[:, 1 * H:2 * H]      # -1.0 offset already folded into b2
    out_gate = sig[:, 2 * H:3 * H]
    in_transform = jnp.tanh(g[:, 3 * H:4 * H])

    cx_new = forget_gate * cx + in_gate * in_transform
    hx_new = out_gate * jnp.tanh(cx_new)

    # Single lane-dense (B, 2H) store of the new carried state.
    state_sc[...] = jnp.concatenate([hx_new, cx_new], axis=1)

    # Write the merged output only on the last step (output block is resident).
    @pl.when(t == pl.num_programs(0) - 1)
    def _():
        out_ref[...] = state_sc[...]


# ---------------------------------------------------------------------------
# Wrappers
# ---------------------------------------------------------------------------
def mlrsnet_cell_seq(inputs_seq, state, packed):
    """Run the cell over a sequence.

    inputs_seq: (T, B, num_inputs); state: (hx, cx) each (B, H).
    Returns the final (hx, cx) after T steps.
    """
    hx0, cx0 = state
    T, B, NI = inputs_seq.shape
    H = hx0.shape[1]
    s0 = jnp.concatenate([hx0, cx0], axis=1)          # (B, 2H)

    w1, b1, w2, b2 = packed["w1"], packed["b1"], packed["w2"], packed["b2"]

    flops = int(T * 2 * B * ((NI + H) * 2 * H + 2 * H * 4 * H))
    transcendentals = int(T * B * 5 * H)              # 3H sigmoid + H tanh + H tanh(cx)
    bytes_accessed = int(4 * (inputs_seq.size + 2 * s0.size
                              + w1.size + b1.size + w2.size + b2.size))

    out = pl.pallas_call(
        mlrs_seq_kernel,
        out_shape=jax.ShapeDtypeStruct((B, 2 * H), jnp.float32),
        grid=(T,),
        in_specs=[
            # per-step input tile (time dim squeezed out)
            pl.BlockSpec((None, B, NI), lambda t: (t, 0, 0)),
            # constant block indices below => stay resident in VMEM, no re-DMA per step
            pl.BlockSpec((B, 2 * H), lambda t: (0, 0)),
            pl.BlockSpec(w1.shape, lambda t: (0, 0)),
            pl.BlockSpec(b1.shape, lambda t: (0, 0)),
            pl.BlockSpec(w2.shape, lambda t: (0, 0)),
            pl.BlockSpec(b2.shape, lambda t: (0, 0)),
        ],
        out_specs=pl.BlockSpec((B, 2 * H), lambda t: (0, 0)),
        scratch_shapes=[pltpu.VMEM((B, 2 * H), jnp.float32)],
        compiler_params=pltpu.CompilerParams(
            dimension_semantics=("arbitrary",)),      # time axis carries state
        cost_estimate=pl.CostEstimate(
            flops=flops, transcendentals=transcendentals,
            bytes_accessed=bytes_accessed),
    )(inputs_seq, s0, w1, b1, w2, b2)

    return out[:, :H], out[:, H:]


def mlrsnet_cell(inputs, state, packed):
    """Single-step forward matching MLRSNetCell.forward(inputs, state)."""
    return mlrsnet_cell_seq(inputs[None], state, packed)


# ---------------------------------------------------------------------------
# Parameter construction / packing
# ---------------------------------------------------------------------------
def init_raw_params(key, num_inputs, hidden_size):
    """Synthetic params in PyTorch layout: weights (out, in), biases (out,)."""
    ks = jax.random.split(key, 8)
    H = hidden_size

    def u(k, shape, r):
        return jax.random.uniform(k, shape, jnp.float32, minval=-r, maxval=r)

    return {
        # fc_i2h: Linear(num_inputs, H) -> ReLU -> Linear(H, 4H)
        "wi1": u(ks[0], (H, num_inputs), 0.1),
        "bi1": u(ks[1], (H,), 1.0 / jnp.sqrt(num_inputs)),
        "wi2": u(ks[2], (4 * H, H), 0.1),
        "bi2": u(ks[3], (4 * H,), 1.0 / jnp.sqrt(H)),
        # fc_h2h: Linear(H, H) -> ReLU -> Linear(H, 4H)
        "wh1": u(ks[4], (H, H), 0.1),
        "bh1": u(ks[5], (H,), 1.0 / jnp.sqrt(H)),
        "wh2": u(ks[6], (4 * H, H), 0.1),
        "bh2": u(ks[7], (4 * H,), 1.0 / jnp.sqrt(H)),
    }


def pack_params(raw, num_inputs, hidden_size):
    """Fuse the four linears into two matmuls + fused biases (trace-time, free)."""
    H = hidden_size
    NI = num_inputs

    # Block-diagonal first-layer weight: (NI + H, 2H)
    w1 = jnp.zeros((NI + H, 2 * H), jnp.float32)
    w1 = w1.at[:NI, :H].set(raw["wi1"].T)      # x  -> columns 0:H
    w1 = w1.at[NI:, H:].set(raw["wh1"].T)      # hx -> columns H:2H
    b1 = jnp.concatenate([raw["bi1"], raw["bh1"]]).reshape(1, 2 * H)

    # Stacked second-layer weight: (2H, 4H)
    w2 = jnp.concatenate([raw["wi2"].T, raw["wh2"].T], axis=0)
    b2 = (raw["bi2"] + raw["bh2"])
    # Fold the forget-gate "-1.0" offset into the fused bias.
    b2 = b2.at[H:2 * H].add(-1.0)
    b2 = b2.reshape(1, 4 * H)

    return {"w1": w1, "b1": b1, "w2": w2, "b2": b2}


# ---------------------------------------------------------------------------
# Pure-JAX reference (matches the PyTorch forward semantics exactly)
# ---------------------------------------------------------------------------
def reference_cell(raw, inputs, state):
    hx, cx = state
    H = hx.shape[1]
    h_i = jnp.maximum(inputs @ raw["wi1"].T + raw["bi1"], 0.0)
    i2h = h_i @ raw["wi2"].T + raw["bi2"]
    h_h = jnp.maximum(hx @ raw["wh1"].T + raw["bh1"], 0.0)
    h2h = h_h @ raw["wh2"].T + raw["bh2"]
    g = i2h + h2h
    in_gate = jax.nn.sigmoid(g[:, 0:H])
    forget_gate = jax.nn.sigmoid(g[:, H:2 * H] - 1.0)
    out_gate = jax.nn.sigmoid(g[:, 2 * H:3 * H])
    in_transform = jnp.tanh(g[:, 3 * H:4 * H])
    cx_new = forget_gate * cx + in_gate * in_transform
    hx_new = out_gate * jnp.tanh(cx_new)
    return hx_new, cx_new


def reference_seq(raw, inputs_seq, state):
    hx, cx = state
    for t in range(inputs_seq.shape[0]):
        hx, cx = reference_cell(raw, inputs_seq[t], (hx, cx))
    return hx, cx


# ---------------------------------------------------------------------------
if __name__ == "__main__":
    B, num_inputs, hidden, T = 8, 16, 32, 8

    key = jax.random.PRNGKey(0)
    k_p, k_x, k_h, k_c = jax.random.split(key, 4)

    raw = init_raw_params(k_p, num_inputs, hidden)
    packed = pack_params(raw, num_inputs, hidden)

    xs = jax.random.normal(k_x, (T, B, num_inputs), jnp.float32)
    hx0 = jax.random.normal(k_h, (B, hidden), jnp.float32)
    cx0 = jax.random.normal(k_c, (B, hidden), jnp.float32)

    # --- single-step forward (module semantics) ---
    hx1, cx1 = mlrsnet_cell(xs[0], (hx0, cx0), packed)
    jax.block_until_ready((hx1, cx1))
    hx1_ref, cx1_ref = reference_cell(raw, xs[0], (hx0, cx0))
    assert jnp.allclose(hx1, hx1_ref, atol=1e-5, rtol=1e-5)
    assert jnp.allclose(cx1, cx1_ref, atol=1e-5, rtol=1e-5)

    # --- full-sequence forward (time loop inside the kernel) ---
    hxT, cxT = mlrsnet_cell_seq(xs, (hx0, cx0), packed)
    jax.block_until_ready((hxT, cxT))
    hxT_ref, cxT_ref = reference_seq(raw, xs, (hx0, cx0))
    assert jnp.allclose(hxT, hxT_ref, atol=1e-4, rtol=1e-4)
    assert jnp.allclose(cxT, cxT_ref, atol=1e-4, rtol=1e-4)

    print("KERNEL_OK")
</pallas_src>

<mosaic_0001>
module attributes {stable_mosaic.version = 11 : i64} {
  func.func @mlrs_seq_kernel(%arg0: i32, %arg1: memref<1x8x16xf32, #tpu.memory_space<vmem>>, %arg2: memref<8x64xf32, #tpu.memory_space<vmem>>, %arg3: memref<48x64xf32, #tpu.memory_space<vmem>>, %arg4: memref<1x64xf32, #tpu.memory_space<vmem>>, %arg5: memref<64x128xf32, #tpu.memory_space<vmem>>, %arg6: memref<1x128xf32, #tpu.memory_space<vmem>>, %arg7: memref<8x64xf32, #tpu.memory_space<vmem>>, %arg8: memref<8x64xf32, #tpu.memory_space<vmem>>) attributes {dimension_semantics = [#tpu.dimension_semantics<arbitrary>], iteration_bounds = array<i64: 1>, scalar_prefetch = 0 : i64, scratch_operands = 1 : i64, tpu.core_type = #tpu.core_type<tc>, window_params = [{transform_indices = @transform_0, window_bounds = array<i64: 1, 8, 16>}, {pipeline_mode = #tpu.pipeline_mode<synchronous>, transform_indices = @transform_1, window_bounds = array<i64: 8, 64>}, {pipeline_mode = #tpu.pipeline_mode<synchronous>, transform_indices = @transform_2, window_bounds = array<i64: 48, 64>}, {pipeline_mode = #tpu.pipeline_mode<synchronous>, transform_indices = @transform_3, window_bounds = array<i64: 1, 64>}, {pipeline_mode = #tpu.pipeline_mode<synchronous>, transform_indices = @transform_4, window_bounds = array<i64: 64, 128>}, {pipeline_mode = #tpu.pipeline_mode<synchronous>, transform_indices = @transform_5, window_bounds = array<i64: 1, 128>}, {pipeline_mode = #tpu.pipeline_mode<synchronous>, transform_indices = @transform_6, window_bounds = array<i64: 8, 64>}]} {
    %c0_i32 = arith.constant 0 : i32
    %0 = arith.cmpi eq, %arg0, %c0_i32 : i32
    %1 = arith.extui %0 : i1 to i32
    %c0_i32_0 = arith.constant 0 : i32
    %2 = arith.cmpi ne, %1, %c0_i32_0 : i32
    scf.if %2 {
      %c0_20 = arith.constant 0 : index
      %c0_21 = arith.constant 0 : index
      %42 = vector.load %arg2[%c0_20, %c0_21] : memref<8x64xf32, #tpu.memory_space<vmem>>, vector<8x64xf32>
      %c0_22 = arith.constant 0 : index
      %c0_23 = arith.constant 0 : index
      %43 = vector.load %arg8[%c0_22, %c0_23] : memref<8x64xf32, #tpu.memory_space<vmem>>, vector<8x64xf32>
      tpu.vector_store %arg8[%c0_22, %c0_23], %42 {strides = array<i32>} : memref<8x64xf32, #tpu.memory_space<vmem>>, vector<8x64xf32>,
    } else {
    }
    %c0 = arith.constant 0 : index
    %c0_1 = arith.constant 0 : index
    %c0_2 = arith.constant 0 : index
    %3 = vector.load %arg1[%c0, %c0_1, %c0_2] : memref<1x8x16xf32, #tpu.memory_space<vmem>>, vector<1x8x16xf32>
    %4 = vector.shape_cast %3 : vector<1x8x16xf32> to vector<8x16xf32>
    %c0_3 = arith.constant 0 : index
    %c0_4 = arith.constant 0 : index
    %5 = vector.load %arg8[%c0_3, %c0_4] : memref<8x64xf32, #tpu.memory_space<vmem>>, vector<8x64xf32>
    %6 = vector.extract_strided_slice %5 {offsets = [0, 0], sizes = [8, 32], strides = [1, 1]} : vector<8x64xf32> to vector<8x32xf32>
    %7 = vector.extract_strided_slice %5 {offsets = [0, 32], sizes = [8, 32], strides = [1, 1]} : vector<8x64xf32> to vector<8x32xf32>
    %8 = tpu.concatenate %4, %6 in 1 : vector<8x16xf32>, vector<8x32xf32> -> vector<8x48xf32>
    %c0_5 = arith.constant 0 : index
    %c0_6 = arith.constant 0 : index
    %9 = vector.load %arg3[%c0_5, %c0_6] : memref<48x64xf32, #tpu.memory_space<vmem>>, vector<48x64xf32>
    %cst = arith.constant dense<0.000000e+00> : vector<8x64xf32>
    %10 = tpu.matmul %8, %9, %cst {dimension_numbers = #tpu.dot_dimension_numbers<[1], [0], [0], [1], [0, 0, 1, 1], [], []>} : vector<8x48xf32>, vector<48x64xf32>, vector<8x64xf32> -> vector<8x64xf32>
    %c0_7 = arith.constant 0 : index
    %c0_8 = arith.constant 0 : index
    %11 = vector.load %arg4[%c0_7, %c0_8] : memref<1x64xf32, #tpu.memory_space<vmem>>, vector<1x64xf32>
    %12 = vector.broadcast %11 : vector<1x64xf32> to vector<8x64xf32>
    %13 = arith.addf %10, %12 : vector<8x64xf32>
    %cst_9 = arith.constant 0.000000e+00 : f32
    %14 = vector.broadcast %cst_9 : f32 to vector<8x64xf32>
    %15 = arith.maximumf %13, %14 : vector<8x64xf32>
    %c0_10 = arith.constant 0 : index
    %c0_11 = arith.constant 0 : index
    %16 = vector.load %arg5[%c0_10, %c0_11] : memref<64x128xf32, #tpu.memory_space<vmem>>, vector<64x128xf32>
    %cst_12 = arith.constant dense<0.000000e+00> : vector<8x128xf32>
    %17 = tpu.matmul %15, %16, %cst_12 {dimension_numbers = #tpu.dot_dimension_numbers<[1], [0], [0], [1], [0, 0, 1, 1], [], []>} : vector<8x64xf32>, vector<64x128xf32>, vector<8x128xf32> -> vector<8x128xf32>
    %c0_13 = arith.constant 0 : index
    %c0_14 = arith.constant 0 : index
    %18 = vector.load %arg6[%c0_13, %c0_14] : memref<1x128xf32, #tpu.memory_space<vmem>>, vector<1x128xf32>
    %19 = vector.broadcast %18 : vector<1x128xf32> to vector<8x128xf32>
    %20 = arith.addf %17, %19 : vector<8x128xf32>
    %21 = vector.extract_strided_slice %20 {offsets = [0, 0], sizes = [8, 96], strides = [1, 1]} : vector<8x128xf32> to vector<8x96xf32>
    %22 = arith.negf %21 : vector<8x96xf32>
    %23 = math.exp %22 : vector<8x96xf32>
    %cst_15 = arith.constant 1.000000e+00 : f32
    %24 = vector.broadcast %cst_15 : f32 to vector<8x96xf32>
    %25 = arith.addf %24, %23 : vector<8x96xf32>
    %26 = arith.divf %24, %25 : vector<8x96xf32>
    %27 = vector.extract_strided_slice %26 {offsets = [0, 0], sizes = [8, 32], strides = [1, 1]} : vector<8x96xf32> to vector<8x32xf32>
    %28 = vector.extract_strided_slice %26 {offsets = [0, 32], sizes = [8, 32], strides = [1, 1]} : vector<8x96xf32> to vector<8x32xf32>
    %29 = vector.extract_strided_slice %26 {offsets = [0, 64], sizes = [8, 32], strides = [1, 1]} : vector<8x96xf32> to vector<8x32xf32>
    %30 = vector.extract_strided_slice %20 {offsets = [0, 96], sizes = [8, 32], strides = [1, 1]} : vector<8x128xf32> to vector<8x32xf32>
    %31 = math.tanh %30 : vector<8x32xf32>
    %32 = arith.mulf %28, %7 : vector<8x32xf32>
    %33 = arith.mulf %27, %31 : vector<8x32xf32>
    %34 = arith.addf %32, %33 : vector<8x32xf32>
    %35 = math.tanh %34 : vector<8x32xf32>
    %36 = arith.mulf %29, %35 : vector<8x32xf32>
    %37 = tpu.concatenate %36, %34 in 1 : vector<8x32xf32>, vector<8x32xf32> -> vector<8x64xf32>
    %c0_16 = arith.constant 0 : index
    %c0_17 = arith.constant 0 : index
    %38 = vector.load %arg8[%c0_16, %c0_17] : memref<8x64xf32, #tpu.memory_space<vmem>>, vector<8x64xf32>
    tpu.vector_store %arg8[%c0_16, %c0_17], %37 {strides = array<i32>} : memref<8x64xf32, #tpu.memory_space<vmem>>, vector<8x64xf32>,
    %c0_i32_18 = arith.constant 0 : i32
    %39 = arith.cmpi eq, %arg0, %c0_i32_18 : i32
    %40 = arith.extui %39 : i1 to i32
    %c0_i32_19 = arith.constant 0 : i32
    %41 = arith.cmpi ne, %40, %c0_i32_19 : i32
    scf.if %41 {
      %c0_20 = arith.constant 0 : index
      %c0_21 = arith.constant 0 : index
      %42 = vector.load %arg8[%c0_20, %c0_21] : memref<8x64xf32, #tpu.memory_space<vmem>>, vector<8x64xf32>
      %c0_22 = arith.constant 0 : index
      %c0_23 = arith.constant 0 : index
      %43 = vector.load %arg7[%c0_22, %c0_23] : memref<8x64xf32, #tpu.memory_space<vmem>>, vector<8x64xf32>
      tpu.vector_store %arg7[%c0_22, %c0_23], %42 {strides = array<i32>} : memref<8x64xf32, #tpu.memory_space<vmem>>, vector<8x64xf32>,
    } else {
    }
    return
  }
  func.func @transform_0(%arg0: i32) -> (i32, i32, i32) {
    %c0_i32 = arith.constant 0 : i32
    %c0_i32_0 = arith.constant 0 : i32
    %c0_i32_1 = arith.constant 0 : i32
    return %arg0, %c0_i32, %c0_i32_0 : i32, i32, i32
  }
  func.func @transform_1(%arg0: i32) -> (i32, i32) {
    %c0_i32 = arith.constant 0 : i32
    %c0_i32_0 = arith.constant 0 : i32
    %c0_i32_1 = arith.constant 0 : i32
    return %c0_i32, %c0_i32_0 : i32, i32
  }
  func.func @transform_2(%arg0: i32) -> (i32, i32) {
    %c0_i32 = arith.constant 0 : i32
    %c0_i32_0 = arith.constant 0 : i32
    %c0_i32_1 = arith.constant 0 : i32
    return %c0_i32, %c0_i32_0 : i32, i32
  }
  func.func @transform_3(%arg0: i32) -> (i32, i32) {
    %c0_i32 = arith.constant 0 : i32
    %c0_i32_0 = arith.constant 0 : i32
    %c0_i32_1 = arith.constant 0 : i32
    return %c0_i32, %c0_i32_0 : i32, i32
  }
  func.func @transform_4(%arg0: i32) -> (i32, i32) {
    %c0_i32 = arith.constant 0 : i32
    %c0_i32_0 = arith.constant 0 : i32
    %c0_i32_1 = arith.constant 0 : i32
    return %c0_i32, %c0_i32_0 : i32, i32
  }
  func.func @transform_5(%arg0: i32) -> (i32, i32) {
    %c0_i32 = arith.constant 0 : i32
    %c0_i32_0 = arith.constant 0 : i32
    %c0_i32_1 = arith.constant 0 : i32
    return %c0_i32, %c0_i32_0 : i32, i32
  }
  func.func @transform_6(%arg0: i32) -> (i32, i32) {
    %c0_i32 = arith.constant 0 : i32
    %c0_i32_0 = arith.constant 0 : i32
    %c0_i32_1 = arith.constant 0 : i32
    return %c0_i32, %c0_i32_0 : i32, i32
  }
}

</mosaic_0001>

<bundles_post_ra>
// kernel: tpu_custom_call.1
= control target key start
LH: loop header
LB: loop body
LE: loop exit
PB: predicated region body
PF: predicated region fallthrough
CT: control target
= control target key end

     0   :  { %11 = vsyncpa [#allocation4], 0  ;;  %s458_s0 = inlined_call_operand.hbm [shape: f32[1,8,16], index: 0, kind: input, shape index: {}]   ;;  %s459_s1 = inlined_call_operand.hbm [shape: f32[8,64], index: 1, kind: input, shape index: {}]   ;;  %s460_s2 = inlined_call_operand.hbm [shape: f32[48,64], index: 2, kind: input, shape index: {}]   ;;  %s461_s3 = inlined_call_operand.vmem [shape: f32[1,64], index: 3, kind: input, shape index: {}]   ;;  %s462_s4 = inlined_call_operand.hbm [shape: f32[64,128], index: 4, kind: input, shape index: {}]   ;;  %s463_s5 = inlined_call_operand.vmem [shape: f32[1,128], index: 5, kind: input, shape index: {}]   ;;  %s464_s6 = inlined_call_operand.hbm [shape: f32[8,64], index: 6, kind: output, shape index: {}]  }
   0x1   :  { %12 = vsyncpa [#allocation7], 0 }
   0x2   :  { %13 = vsyncpa [#allocation10], 0  ;;  %s31_s23 = sshll.u32 %s459_s1, 4  ;;  %s32_s23 = int_to_ptr.hbm [resolvable:$true] %s31_s23 }
   0x3   :  { %14 = vsyncpa [#allocation5], 0  ;;  %s388_s24 = smov [#allocation6]   ;;  %s20_s28 = sshll.u32 %s458_s0, 4  ;;  %s21_s28 = int_to_ptr.hbm [resolvable:$true] %s20_s28 }
   0x4   :  { %s33_s25 = sshll.u32 %s388_s24, 4  ;;  %s389_s29 = smov [#allocation3]   ;;  %s34_s25 = int_to_ptr.vmem [resolvable:$true] %s33_s25 }
   0x5   :  { %36 = dma.hbm_to_vmem [thread:$0]  %s32_s23, 128, %s34_s25, [#allocation7]  }
   0x6   :  { %s22_s30 = sshll.u32 %s389_s29, 4  ;;  %s41_s9 = sshll.u32 %s460_s2, 4  ;;  %s23_s30 = int_to_ptr.vmem [resolvable:$true] %s22_s30  ;;  %s42_s9 = int_to_ptr.hbm [resolvable:$true] %s41_s9 }
   0x7   :  { %25 = dma.hbm_to_vmem [thread:$0]  %s21_s28, 128, %s23_s30, [#allocation4]  }
   0x8   :  { %s390_s1 = smov [#allocation8]   ;;  %s56_s13 = sshll.u32 %s462_s4, 4  ;;  %s57_s13 = int_to_ptr.hbm [resolvable:$true] %s56_s13 }
   0x9   :  { %s43_s10 = sshll.u32 %s390_s1, 4  ;;  %s391_s14 = smov 128   ;;  %s44_s10 = int_to_ptr.vmem [resolvable:$true] %s43_s10 }
   0xa   :  { %s392_s0 = smov 8   ;;  %s393_s15 = smov [#allocation9]  }
   0xb   :  { %49 = dma.hbm_to_vmem [thread:$0]  %s42_s9, 768, %s44_s10, [#allocation7], %s391_s14, %s391_s14, %s392_s0  }
   0xc   :  { %s58_s16 = sshll.u32 %s393_s15, 4  ;;  %s59_s16 = int_to_ptr.vmem [resolvable:$true] %s58_s16 }
   0xd   :  { %64 = dma.hbm_to_vmem [thread:$0]  %s57_s13, 1024, %s59_s16, [#allocation10], %s391_s14, %s391_s14, %s392_s0  }
   0xe   :  { %380 = dma.done.wait [#allocation4], 128  }
   0xf   :  { %381 = vsyncadd [#allocation4], 4294967168 }
  0x10   :  { %382 = dma.done.wait [#allocation7], 896  }
  0x11   :  { %383 = vsyncadd [#allocation7], 4294966400 }
  0x12   :  { %384 = dma.done.wait [#allocation10], 1024  }
  0x13   :  { %385 = vsyncadd [#allocation10], 4294966272  ;;  %vm88_vm0 = vcmask 523264   ;;  %v87_v0 = vld [vmem:[#allocation6] sm:$0xff]  ;;  %v103_v1 = vld [vmem:[#allocation8 + $0x28] sm:$0xff]  ;;  %s394_s2 = smov 16  }
  0x14   :  { %v102_v2 = vld [vmem:[#allocation8 + $0x20] sm:$0xff]  ;;  %89 = vst.msk [vmem:[#allocation2] sm:$0xff] %vm88_vm0, %v87_v0  ;;  %122 = vmatpush.msra.mxu0 %v103_v1  ;;  %v101_v3 = vld [vmem:[#allocation8 + $0x18] sm:$0xff]  ;;  %v100_v4 = vld [vmem:[#allocation8 + $0x10] sm:$0xff]  ;;  %vm96_vm1 = vcmask 130048   ;;  %vm108_vm2 = vcmask 392192  }
  0x15   :  { %v99_v5 = vld [vmem:[#allocation8 + $0x8] sm:$0xff]  ;;  %v98_v7 = vld [vmem:[#allocation8] sm:$0xff]  ;;  %v138_v10 = vld [vmem:[#allocation9 + $0x28] sm:$0xff]  ;;  %s395_s20 = smov 32   ;;  %vm210_vm7 = vcmask 261120   ;;  %s225_s24 = sshll.u32 %s464_s6, 4  ;;  %s226_s24 = int_to_ptr.hbm [resolvable:$true] %s225_s24 }
  0x16   :  { %123 = vmatpush.msra.mxu0 %v102_v2  ;;  %v140_v8 = vld [vmem:[#allocation9 + $0x38] sm:$0xff]  ;;  %v139_v9 = vld [vmem:[#allocation9 + $0x30] sm:$0xff]  ;;  %v137_v11 = vld [vmem:[#allocation9 + $0x20] sm:$0xff] }
  0x17   :  { %157 = vmatpush.msra.mxu1 %v140_v8  ;;  %v136_v12 = vld [vmem:[#allocation9 + $0x18] sm:$0xff]  ;;  %v90_v13 = vld [vmem:[#allocation3] sm:$0xff]  ;;  %v135_v16 = vld [vmem:[#allocation9 + $0x10] sm:$0xff] }
  0x18   :  { %124 = vmatpush.msra.mxu0 %v101_v3  ;;  %v134_v17 = vld [vmem:[#allocation9 + $0x8] sm:$0xff]  ;;  %v133_v18 = vld [vmem:[#allocation9] sm:$0xff]  ;;  %v250_v19 = vld [vmem:[%s461_s3] ss:$0 sm:$0xff]  ;;  %s396_s3 = smov 64  }
  0x19   :  { %158 = vmatpush.msra.mxu1 %v139_v9  ;;  %v251_v23 = vld [vmem:[%s463_s5] ss:$0 sm:$0xff]  ;;  %s397_s5 = smov [#allocation11]  }
  0x1a   :  { %125 = vmatpush.msra.mxu0 %v100_v4  ;;  %s223_s21 = sshll.u32 %s397_s5, 4  ;;  %s224_s21 = int_to_ptr.vmem [resolvable:$true] %s223_s21 }
  0x1b   :  { %v91_v6 = vld [vmem:[#allocation2] sm:$0xff]  ;;  %159 = vmatpush.msra.mxu1 %v138_v10 }
  0x1c   :  { %93 = vrot.lane.b32.xlu0 %v91_v6, %s394_s2  ;;  %126 = vmatpush.msra.mxu0 %v99_v5 }
  0x1d   :  { %160 = vmatpush.msra.mxu1 %v137_v11 }
  0x1e   :  { %127 = vmatpush.msra.mxu0 %v98_v7 }
  0x1f   :  { %161 = vmatpush.msra.mxu1 %v136_v12 }
  0x21   :  { %162 = vmatpush.msra.mxu1 %v135_v16 }
  0x23   :  { %163 = vmatpush.msra.mxu1 %v134_v17 }
  0x25   :  { %164 = vmatpush.msra.mxu1 %v133_v18 }
  0x8e   :  { %v94_v14 = vpop.permute.xlu0 %93 }
  0x8f   :  { %v97_v15 = vsel %vm96_vm1, %v90_v13, %v94_v14 }
  0x90   :  { %237 = vmatmul.msk.f32.vlgmr.msra.gmra.mxu0 %vm108_vm2, %v97_v15 }
 0x10d   :  { %v129_v20 = vpop.f32.mrf.mxu0 }
 0x10e   :  { %v130_v21 = vadd.f32 %v250_v19, %v129_v20 }
 0x110   :  { %v132_v22 = vmax.f32 %v130_v21, 0.0 }
 0x112   :  { %238 = vmatmul.msk.f32.vlgmr.msra.gmra.mxu1 %vm88_vm0, %v132_v22 }
 0x18f   :  { %v166_v24 = vpop.f32.mrf.mxu1 }
 0x190   :  { %v167_v25 = vadd.f32 %v251_v23, %v166_v24 }
 0x192   :  { %252 = vtanh.f32 %v167_v25  ;;  %v239_v27 = vmul.f32 -1.442695, %v167_v25 }
 0x194   :  { %254 = vpow2.f32 %v239_v27 }
 0x198   :  { %v253_v26 = vpop.eup %252 }
 0x199   :  { %191 = vrot.lane.b32.xlu0 %v253_v26, %s395_s20 }
 0x19a   :  { %v255_v28 = vpop.eup %254 }
 0x19b   :  { %v172_v29 = vadd.f32 1.0, %v255_v28 }
 0x19d   :  { %256 = vrcp.f32 %v172_v29  ;;  %v184_v35 = vand.u32 2147483648, %v172_v29  ;;  %vm178_vm4 = vweird.f32 %v172_v29  ;;  %v182_v36 = vand.u32 2147483647, %v172_v29 }
 0x19f   :  { %v185_v38 = vor.u32 1.1754944e-38, %v184_v35  ;;  %vm183_vm6 = vcmp.eq.f32.partialorder %v182_v36, 8.507059e+37 }
 0x1a3   :  { %v257_v30 = vpop.eup %256 }
 0x1a4   :  { %v174_v31 = vmul.f32 %v257_v30, %v172_v29  ;;  %vm179_vm3 = vweird.f32 %v257_v30 }
 0x1a5   :  { %vm180_vm5 = vmor %vm178_vm4, %vm179_vm3 }
 0x1a6   :  { %v175_v32 = vsub.f32 1.0, %v174_v31 }
 0x1a8   :  { %v176_v33 = vmul.f32 %v257_v30, %v175_v32 }
 0x1aa   :  { %v177_v34 = vadd.f32 %v257_v30, %v176_v33 }
 0x1ac   :  { %v181_v37 = vsel %vm180_vm5, %v257_v30, %v177_v34 }
 0x1ad   :  { %v186_v40 = vsel %vm183_vm6, %v185_v38, %v181_v37 }
 0x1ae   :  { %v189_v42 = vmul.f32 %v186_v40, %v91_v6 }
 0x20b   :  { %v192_v39 = vpop.permute.xlu0 %191 }
 0x20c   :  { %v194_v41 = vmul.f32 %v192_v39, %v186_v40 }
 0x20e   :  { %196 = vrot.lane.b32.xlu1 %v194_v41, %s395_s20 }
 0x280   :  { %v197_v43 = vpop.permute.xlu1 %196 }
 0x281   :  { %v199_v44 = vadd.f32 %v197_v43, %v189_v42 }
 0x283   :  { %258 = vtanh.f32 %v199_v44 }
 0x289   :  { %v259_v45 = vpop.eup %258 }
 0x28a   :  { %202 = vrot.lane.b32.xlu1 %v259_v45, %s395_s20 }
 0x2fc   :  { %v203_v46 = vpop.permute.xlu1 %202 }
 0x2fd   :  { %v205_v47 = vmul.f32 %v203_v46, %v186_v40 }
 0x2ff   :  { %207 = vrot.lane.b32.xlu2 %v205_v47, %s396_s3 }
 0x359   :  { %v208_v48 = vpop.permute.xlu2 %207 }
 0x35a   :  { %v211_v49 = vsel %vm210_vm7, %v208_v48, %v199_v44 }
 0x35b   :  { %212 = vst.msk [vmem:[#allocation2] sm:$0xff] %vm88_vm0, %v211_v49 }
 0x362   :  { %v216_v50 = vld [vmem:[#allocation2] sm:$0xff] }
 0x363   :  { %217 = vst.msk [vmem:[#allocation11] sm:$0xff] %vm88_vm0, %v216_v50 }
 0x364   :  { %228 = dma.vmem_to_hbm [thread:$0]  %s224_s21, 128, %s226_s24, [#allocation5]  }
 0x365   :  { %386 = dma.done.wait [#allocation5], 128  }
 0x366   :  { %387 = vsyncadd [#allocation5], 4294967168 }
 0x367   :  { %233 = vsyncpa [#allocation4], 1 }
 0x368   :  { %234 = vsyncpa [#allocation7], 1 }
 0x369   :  { %235 = vsyncpa [#allocation10], 1 }
 0x36a   :  { %236 = vsyncpa [#allocation5], 1 }

</bundles_post_ra>
